<compile_context>
chip_gen: v6e
topology: v6e:2x2x1
jax: 0.10.0
libtpu: 0.0.40
codegen_flags: <defaults>
</compile_context>

<pallas_src>
import jax
import jax.numpy as jnp
from jax import lax
from jax.experimental import pallas as pl
from jax.experimental.pallas import tpu as pltpu


def _is_single_tensorcore_chip() -> bool:
    """True on single-TensorCore TPUs (v5e / v6e): collapse the batch grid there."""
    try:
        kind = jax.devices()[0].device_kind.lower()
    except Exception:
        return False
    return any(tag in kind for tag in ("v5 lite", "v5litepod", "v5e", "v6 lite", "v6e"))


def _make_conv_softmax_kernel(bs, c, oc, kh, kw, h, w):
    """Kernel over `bs` samples resident in one grid step (bs is 1 or N)."""
    oh, ow = h - kh + 1, w - kw + 1
    hw = h * w
    # Flat-index shift of tap (ki, kj): reading x_flat[c, p + ki*W + kj] at output
    # position p = y*W + x gives X[c, y+ki, x+kj] for every valid output position
    # (no row wrap because x + kj < W); invalid positions are masked below.
    shifts = [ki * w + kj for ki in range(kh) for kj in range(kw)]

    def kernel(x_ref, w_ref, o_ref):
        # x_ref: (bs, C, HWP)    flattened input, zero-padded on lanes past H*W
        # w_ref: (KH*KW, OC, C)  conv weight, one (OC, C) tile per tap
        # o_ref: (bs, OC, HW)    softmax probabilities on the padded H*W lane grid

        # Valid-output mask on the lane-dense (OC, HW) tile.  Lane p encodes the
        # spatial position (y, x) = (p // W, p % W); only y < OH and x < OW are
        # real conv outputs.  Constant across samples -> hoisted out of the loop.
        col = lax.broadcasted_iota(jnp.int32, (oc, hw), 1)
        if (w & (w - 1)) == 0:            # power-of-two W: cheap bit-mask, no int mod
            xpos = col & (w - 1)
        else:
            xpos = col % w
        valid = (xpos < ow) & (col < oh * w)      # col < OH*W  <=>  (col // W) < OH
        neg = jnp.float32(-1e30)

        for b in range(bs):                        # static unroll
            xb = x_ref[b]                          # (C, HWP)
            acc = jnp.zeros((oc, hw), jnp.float32)
            for t, s in enumerate(shifts):
                xs = xb[:, s:s + hw]               # (C, HW) static shifted window
                acc = acc + jnp.dot(w_ref[t], xs,
                                    preferred_element_type=jnp.float32)

            # Softmax over the whole (OC, HW) tile == softmax over the flattened
            # per-sample conv output; padded lanes are excluded from max & sum.
            logits = jnp.where(valid, acc, neg)
            mx = jnp.max(jnp.max(logits, axis=1, keepdims=True),
                         axis=0, keepdims=True)                    # (1, 1)
            e = jnp.exp(logits - mx)               # padded lanes -> exactly 0
            ssum = jnp.sum(jnp.sum(e, axis=1, keepdims=True),
                           axis=0, keepdims=True)                  # (1, 1)
            # One reciprocal on a scalar + a broadcast multiply instead of an
            # elementwise divide.  approx=False keeps the tight cross-check;
            # switch to approx=True if tolerances are ever loosened.
            inv = pl.reciprocal(ssum, approx=False)
            o_ref[b] = (e * inv).astype(o_ref.dtype)

    return kernel


@jax.jit
def conv2d_softmax(x, weight):
    """Conv2d(stride=1, padding=0, bias=False) then softmax over the flattened
    per-sample output -- the PyTorch Conv2d_softmax forward.

    x:      (N, C, H, W)    float32, NCHW (PyTorch layout)
    weight: (OC, C, KH, KW)
    returns (N, OC*OH*OW)
    """
    n, c, h, w = x.shape
    oc, _, kh, kw = weight.shape
    oh, ow = h - kh + 1, w - kw + 1
    hw = h * w

    # Flatten the spatial dims (free, contiguous) and zero-pad the lane dim so
    # every in-kernel shifted window [s : s + H*W] stays in bounds and the x
    # block is lane-dense (multiple of 128).
    max_shift = (kh - 1) * w + (kw - 1)
    hwp = ((hw + max_shift + 127) // 128) * 128
    x_flat = jnp.pad(x.reshape(n, c, hw), ((0, 0), (0, 0), (0, hwp - hw)))

    # Reorder the conv weight so each tap t = ki*KW + kj is a clean (OC, C) tile.
    w_taps = jnp.transpose(weight, (2, 3, 0, 1)).reshape(kh * kw, oc, c)

    # Grid choice per chip generation:
    #   * multi-TC (v7x): one sample per "parallel" grid step -> one per core.
    #   * single-TC (v5e/v6e): fold the batch into one grid step -- one larger
    #     DMA and no per-step pipeline overhead.
    if n > 1 and not _is_single_tensorcore_chip():
        bs, grid, sem = 1, (n,), ("parallel",)
    else:
        bs, grid, sem = n, (1,), ("arbitrary",)

    kernel = _make_conv_softmax_kernel(bs, c, oc, kh, kw, h, w)

    out = pl.pallas_call(
        kernel,
        out_shape=jax.ShapeDtypeStruct((n, oc, hw), x.dtype),
        grid_spec=pltpu.PrefetchScalarGridSpec(
            num_scalar_prefetch=0,
            grid=grid,
            in_specs=[
                # TODO(synk): at much larger C/H/W, cast these operands to bf16
                # for the matmul on v5e (keep the softmax in f32).
                pl.BlockSpec((bs, c, hwp), lambda i: (i, 0, 0)),       # x
                pl.BlockSpec((kh * kw, oc, c), lambda i: (0, 0, 0)),   # weight taps
            ],
            out_specs=pl.BlockSpec((bs, oc, hw), lambda i: (i, 0, 0)),
        ),
        compiler_params=pltpu.CompilerParams(dimension_semantics=sem),
    )(x_flat, w_taps)

    # De-pad + flatten as one fused wrapper op: crop the padded H*W lane grid to
    # (OH, OW) and row-major flatten -- matches PyTorch's x.view(N, -1) on NCHW.
    return out.reshape(n, oc, h, w)[:, :, :oh, :ow].reshape(n, oc * oh * ow)


if __name__ == "__main__":
    # Module: Conv2d_softmax(in_channels=4, out_channels=8, kernel_size=3)
    N, C, H, W = 2, 4, 16, 16
    OC, KH, KW = 8, 3, 3
    OH, OW = H - KH + 1, W - KW + 1

    key = jax.random.PRNGKey(0)
    kx, kw_ = jax.random.split(key, 2)

    x = jax.random.normal(kx, (N, C, H, W), dtype=jnp.float32)
    # Deterministic Conv2d.__init__-shaped weight (kaiming-uniform scale);
    # bias=False per the module spec.
    fan_in = C * KH * KW
    bound = fan_in ** -0.5
    weight = jax.random.uniform(kw_, (OC, C, KH, KW), minval=-bound,
                                maxval=bound, dtype=jnp.float32)

    out = jax.block_until_ready(conv2d_softmax(x, weight))

    # Cross-check against XLA conv + softmax (same semantics as the PyTorch
    # module: Conv2d(bias=False) -> view(N, -1) -> softmax(dim=-1)).
    ref = lax.conv_general_dilated(
        x, weight, window_strides=(1, 1), padding="VALID",
        dimension_numbers=("NCHW", "OIHW", "NCHW"))
    ref = jax.nn.softmax(ref.reshape(N, -1), axis=-1)

    assert out.shape == (N, OC * OH * OW)
    assert jnp.allclose(out, ref, atol=1e-6, rtol=1e-4)
    assert jnp.allclose(jnp.sum(out, axis=-1), 1.0, atol=1e-5)

    print("KERNEL_OK")
</pallas_src>

<mosaic_0001>
module attributes {stable_mosaic.version = 11 : i64} {
  func.func @kernel(%arg0: i32, %arg1: memref<1x4x384xf32, #tpu.memory_space<vmem>>, %arg2: memref<9x8x4xf32, #tpu.memory_space<vmem>>, %arg3: memref<1x8x256xf32, #tpu.memory_space<vmem>>) attributes {dimension_semantics = [#tpu.dimension_semantics<parallel>], iteration_bounds = array<i64: 2>, scalar_prefetch = 0 : i64, scratch_operands = 0 : i64, tpu.core_type = #tpu.core_type<tc>, window_params = [{transform_indices = @transform_0, window_bounds = array<i64: 1, 4, 384>}, {pipeline_mode = #tpu.pipeline_mode<synchronous>, transform_indices = @transform_1, window_bounds = array<i64: 9, 8, 4>}, {transform_indices = @transform_2, window_bounds = array<i64: 1, 8, 256>}]} {
    %0 = tpu.iota {dimensions = array<i32: 1>} : vector<8x256xi32>
    %c15_i32 = arith.constant 15 : i32
    %1 = vector.broadcast %c15_i32 : i32 to vector<8x256xi32>
    %2 = arith.andi %0, %1 : vector<8x256xi32>
    %c14_i32 = arith.constant 14 : i32
    %3 = vector.broadcast %c14_i32 : i32 to vector<8x256xi32>
    %4 = arith.cmpi slt, %2, %3 : vector<8x256xi32>
    %c224_i32 = arith.constant 224 : i32
    %5 = vector.broadcast %c224_i32 : i32 to vector<8x256xi32>
    %6 = arith.cmpi slt, %0, %5 : vector<8x256xi32>
    %7 = arith.andi %4, %6 : vector<8x256xi1>
    %c0 = arith.constant 0 : index
    %c0_0 = arith.constant 0 : index
    %c0_1 = arith.constant 0 : index
    %8 = vector.load %arg1[%c0, %c0_0, %c0_1] : memref<1x4x384xf32, #tpu.memory_space<vmem>>, vector<1x4x384xf32>
    %9 = vector.shape_cast %8 : vector<1x4x384xf32> to vector<4x384xf32>
    %cst = arith.constant 0.000000e+00 : f32
    %10 = vector.broadcast %cst : f32 to vector<8x256xf32>
    %11 = vector.extract_strided_slice %9 {offsets = [0, 0], sizes = [4, 256], strides = [1, 1]} : vector<4x384xf32> to vector<4x256xf32>
    %c0_2 = arith.constant 0 : index
    %c0_3 = arith.constant 0 : index
    %c0_4 = arith.constant 0 : index
    %12 = vector.load %arg2[%c0_2, %c0_3, %c0_4] : memref<9x8x4xf32, #tpu.memory_space<vmem>>, vector<1x8x4xf32>
    %13 = vector.shape_cast %12 : vector<1x8x4xf32> to vector<8x4xf32>
    %cst_5 = arith.constant dense<0.000000e+00> : vector<8x256xf32>
    %14 = tpu.matmul %13, %11, %cst_5 {dimension_numbers = #tpu.dot_dimension_numbers<[1], [0], [0], [1], [0, 0, 1, 1], [], []>} : vector<8x4xf32>, vector<4x256xf32>, vector<8x256xf32> -> vector<8x256xf32>
    %15 = arith.addf %10, %14 : vector<8x256xf32>
    %16 = vector.extract_strided_slice %9 {offsets = [0, 1], sizes = [4, 256], strides = [1, 1]} : vector<4x384xf32> to vector<4x256xf32>
    %c1 = arith.constant 1 : index
    %c0_6 = arith.constant 0 : index
    %c0_7 = arith.constant 0 : index
    %17 = vector.load %arg2[%c1, %c0_6, %c0_7] : memref<9x8x4xf32, #tpu.memory_space<vmem>>, vector<1x8x4xf32>
    %18 = vector.shape_cast %17 : vector<1x8x4xf32> to vector<8x4xf32>
    %cst_8 = arith.constant dense<0.000000e+00> : vector<8x256xf32>
    %19 = tpu.matmul %18, %16, %cst_8 {dimension_numbers = #tpu.dot_dimension_numbers<[1], [0], [0], [1], [0, 0, 1, 1], [], []>} : vector<8x4xf32>, vector<4x256xf32>, vector<8x256xf32> -> vector<8x256xf32>
    %20 = arith.addf %15, %19 : vector<8x256xf32>
    %21 = vector.extract_strided_slice %9 {offsets = [0, 2], sizes = [4, 256], strides = [1, 1]} : vector<4x384xf32> to vector<4x256xf32>
    %c2 = arith.constant 2 : index
    %c0_9 = arith.constant 0 : index
    %c0_10 = arith.constant 0 : index
    %22 = vector.load %arg2[%c2, %c0_9, %c0_10] : memref<9x8x4xf32, #tpu.memory_space<vmem>>, vector<1x8x4xf32>
    %23 = vector.shape_cast %22 : vector<1x8x4xf32> to vector<8x4xf32>
    %cst_11 = arith.constant dense<0.000000e+00> : vector<8x256xf32>
    %24 = tpu.matmul %23, %21, %cst_11 {dimension_numbers = #tpu.dot_dimension_numbers<[1], [0], [0], [1], [0, 0, 1, 1], [], []>} : vector<8x4xf32>, vector<4x256xf32>, vector<8x256xf32> -> vector<8x256xf32>
    %25 = arith.addf %20, %24 : vector<8x256xf32>
    %26 = vector.extract_strided_slice %9 {offsets = [0, 16], sizes = [4, 256], strides = [1, 1]} : vector<4x384xf32> to vector<4x256xf32>
    %c3 = arith.constant 3 : index
    %c0_12 = arith.constant 0 : index
    %c0_13 = arith.constant 0 : index
    %27 = vector.load %arg2[%c3, %c0_12, %c0_13] : memref<9x8x4xf32, #tpu.memory_space<vmem>>, vector<1x8x4xf32>
    %28 = vector.shape_cast %27 : vector<1x8x4xf32> to vector<8x4xf32>
    %cst_14 = arith.constant dense<0.000000e+00> : vector<8x256xf32>
    %29 = tpu.matmul %28, %26, %cst_14 {dimension_numbers = #tpu.dot_dimension_numbers<[1], [0], [0], [1], [0, 0, 1, 1], [], []>} : vector<8x4xf32>, vector<4x256xf32>, vector<8x256xf32> -> vector<8x256xf32>
    %30 = arith.addf %25, %29 : vector<8x256xf32>
    %31 = vector.extract_strided_slice %9 {offsets = [0, 17], sizes = [4, 256], strides = [1, 1]} : vector<4x384xf32> to vector<4x256xf32>
    %c4 = arith.constant 4 : index
    %c0_15 = arith.constant 0 : index
    %c0_16 = arith.constant 0 : index
    %32 = vector.load %arg2[%c4, %c0_15, %c0_16] : memref<9x8x4xf32, #tpu.memory_space<vmem>>, vector<1x8x4xf32>
    %33 = vector.shape_cast %32 : vector<1x8x4xf32> to vector<8x4xf32>
    %cst_17 = arith.constant dense<0.000000e+00> : vector<8x256xf32>
    %34 = tpu.matmul %33, %31, %cst_17 {dimension_numbers = #tpu.dot_dimension_numbers<[1], [0], [0], [1], [0, 0, 1, 1], [], []>} : vector<8x4xf32>, vector<4x256xf32>, vector<8x256xf32> -> vector<8x256xf32>
    %35 = arith.addf %30, %34 : vector<8x256xf32>
    %36 = vector.extract_strided_slice %9 {offsets = [0, 18], sizes = [4, 256], strides = [1, 1]} : vector<4x384xf32> to vector<4x256xf32>
    %c5 = arith.constant 5 : index
    %c0_18 = arith.constant 0 : index
    %c0_19 = arith.constant 0 : index
    %37 = vector.load %arg2[%c5, %c0_18, %c0_19] : memref<9x8x4xf32, #tpu.memory_space<vmem>>, vector<1x8x4xf32>
    %38 = vector.shape_cast %37 : vector<1x8x4xf32> to vector<8x4xf32>
    %cst_20 = arith.constant dense<0.000000e+00> : vector<8x256xf32>
    %39 = tpu.matmul %38, %36, %cst_20 {dimension_numbers = #tpu.dot_dimension_numbers<[1], [0], [0], [1], [0, 0, 1, 1], [], []>} : vector<8x4xf32>, vector<4x256xf32>, vector<8x256xf32> -> vector<8x256xf32>
    %40 = arith.addf %35, %39 : vector<8x256xf32>
    %41 = vector.extract_strided_slice %9 {offsets = [0, 32], sizes = [4, 256], strides = [1, 1]} : vector<4x384xf32> to vector<4x256xf32>
    %c6 = arith.constant 6 : index
    %c0_21 = arith.constant 0 : index
    %c0_22 = arith.constant 0 : index
    %42 = vector.load %arg2[%c6, %c0_21, %c0_22] : memref<9x8x4xf32, #tpu.memory_space<vmem>>, vector<1x8x4xf32>
    %43 = vector.shape_cast %42 : vector<1x8x4xf32> to vector<8x4xf32>
    %cst_23 = arith.constant dense<0.000000e+00> : vector<8x256xf32>
    %44 = tpu.matmul %43, %41, %cst_23 {dimension_numbers = #tpu.dot_dimension_numbers<[1], [0], [0], [1], [0, 0, 1, 1], [], []>} : vector<8x4xf32>, vector<4x256xf32>, vector<8x256xf32> -> vector<8x256xf32>
    %45 = arith.addf %40, %44 : vector<8x256xf32>
    %46 = vector.extract_strided_slice %9 {offsets = [0, 33], sizes = [4, 256], strides = [1, 1]} : vector<4x384xf32> to vector<4x256xf32>
    %c7 = arith.constant 7 : index
    %c0_24 = arith.constant 0 : index
    %c0_25 = arith.constant 0 : index
    %47 = vector.load %arg2[%c7, %c0_24, %c0_25] : memref<9x8x4xf32, #tpu.memory_space<vmem>>, vector<1x8x4xf32>
    %48 = vector.shape_cast %47 : vector<1x8x4xf32> to vector<8x4xf32>
    %cst_26 = arith.constant dense<0.000000e+00> : vector<8x256xf32>
    %49 = tpu.matmul %48, %46, %cst_26 {dimension_numbers = #tpu.dot_dimension_numbers<[1], [0], [0], [1], [0, 0, 1, 1], [], []>} : vector<8x4xf32>, vector<4x256xf32>, vector<8x256xf32> -> vector<8x256xf32>
    %50 = arith.addf %45, %49 : vector<8x256xf32>
    %51 = vector.extract_strided_slice %9 {offsets = [0, 34], sizes = [4, 256], strides = [1, 1]} : vector<4x384xf32> to vector<4x256xf32>
    %c8 = arith.constant 8 : index
    %c0_27 = arith.constant 0 : index
    %c0_28 = arith.constant 0 : index
    %52 = vector.load %arg2[%c8, %c0_27, %c0_28] : memref<9x8x4xf32, #tpu.memory_space<vmem>>, vector<1x8x4xf32>
    %53 = vector.shape_cast %52 : vector<1x8x4xf32> to vector<8x4xf32>
    %cst_29 = arith.constant dense<0.000000e+00> : vector<8x256xf32>
    %54 = tpu.matmul %53, %51, %cst_29 {dimension_numbers = #tpu.dot_dimension_numbers<[1], [0], [0], [1], [0, 0, 1, 1], [], []>} : vector<8x4xf32>, vector<4x256xf32>, vector<8x256xf32> -> vector<8x256xf32>
    %55 = arith.addf %50, %54 : vector<8x256xf32>
    %cst_30 = arith.constant -1.000000e+30 : f32
    %56 = vector.broadcast %cst_30 : f32 to vector<8x256xf32>
    %57 = arith.select %7, %55, %56 : vector<8x256xi1>, vector<8x256xf32>
    %cst_31 = arith.constant dense<0xFF800000> : vector<8xf32>
    %58 = vector.multi_reduction <maximumf>, %57, %cst_31 [1] : vector<8x256xf32> to vector<8xf32>
    %59 = vector.shape_cast %58 : vector<8xf32> to vector<8x1xf32>
    %cst_32 = arith.constant dense<0xFF800000> : vector<1xf32>
    %60 = vector.multi_reduction <maximumf>, %59, %cst_32 [0] : vector<8x1xf32> to vector<1xf32>
    %61 = vector.shape_cast %60 : vector<1xf32> to vector<1x1xf32>
    %62 = vector.broadcast %61 : vector<1x1xf32> to vector<8x256xf32>
    %63 = arith.subf %57, %62 : vector<8x256xf32>
    %64 = math.exp %63 : vector<8x256xf32>
    %cst_33 = arith.constant dense<0.000000e+00> : vector<8xf32>
    %65 = vector.multi_reduction <add>, %64, %cst_33 [1] : vector<8x256xf32> to vector<8xf32>
    %66 = vector.shape_cast %65 : vector<8xf32> to vector<8x1xf32>
    %cst_34 = arith.constant dense<0.000000e+00> : vector<1xf32>
    %67 = vector.multi_reduction <add>, %66, %cst_34 [0] : vector<8x1xf32> to vector<1xf32>
    %68 = vector.shape_cast %67 : vector<1xf32> to vector<1x1xf32>
    %69 = tpu.reciprocal %68 : vector<1x1xf32> -> vector<1x1xf32>
    %70 = vector.broadcast %69 : vector<1x1xf32> to vector<8x256xf32>
    %71 = arith.mulf %64, %70 : vector<8x256xf32>
    %c0_35 = arith.constant 0 : index
    %c0_36 = arith.constant 0 : index
    %c0_37 = arith.constant 0 : index
    %72 = vector.load %arg3[%c0_35, %c0_36, %c0_37] : memref<1x8x256xf32, #tpu.memory_space<vmem>>, vector<1x8x256xf32>
    %73 = vector.shape_cast %72 : vector<1x8x256xf32> to vector<8x256xf32>
    %74 = vector.shape_cast %71 : vector<8x256xf32> to vector<1x8x256xf32>
    tpu.vector_store %arg3[%c0_35, %c0_36, %c0_37], %74 {strides = array<i32>} : memref<1x8x256xf32, #tpu.memory_space<vmem>>, vector<1x8x256xf32>,
    return
  }
  func.func @transform_0(%arg0: i32) -> (i32, i32, i32) {
    %c0_i32 = arith.constant 0 : i32
    %c0_i32_0 = arith.constant 0 : i32
    %c0_i32_1 = arith.constant 0 : i32
    return %arg0, %c0_i32, %c0_i32_0 : i32, i32, i32
  }
  func.func @transform_1(%arg0: i32) -> (i32, i32, i32) {
    %c0_i32 = arith.constant 0 : i32
    %c0_i32_0 = arith.constant 0 : i32
    %c0_i32_1 = arith.constant 0 : i32
    %c0_i32_2 = arith.constant 0 : i32
    return %c0_i32, %c0_i32_0, %c0_i32_1 : i32, i32, i32
  }
  func.func @transform_2(%arg0: i32) -> (i32, i32, i32) {
    %c0_i32 = arith.constant 0 : i32
    %c0_i32_0 = arith.constant 0 : i32
    %c0_i32_1 = arith.constant 0 : i32
    return %arg0, %c0_i32, %c0_i32_0 : i32, i32, i32
  }
}

</mosaic_0001>

<bundles_post_ra>
// kernel: conv2d_softmax.1
= control target key start
LH: loop header
LB: loop body
LE: loop exit
PB: predicated region body
PF: predicated region fallthrough
CT: control target
= control target key end

     0   :  { %s1156_s9 = smov 0   ;;  %s1242_s0 = inlined_call_operand.vmem [shape: f32[2,4,384], index: 0, kind: input, shape index: {}]   ;;  %s1243_s1 = inlined_call_operand.vmem [shape: f32[9,8,4], index: 1, kind: input, shape index: {}]   ;;  %s1244_s2 = inlined_call_operand.vmem [shape: f32[2,8,256], index: 2, kind: output, shape index: {}]  }
   0x1 LB: > { %s1053_s10 = sadd.s32 4294967295, %s1130_s9   ;;  %p1057_p0 = scmp.ge.s32.totalorder %s1130_s9, 1  ;;  %s1130_s9 = sphi %s1156_s9, %s12_s9  }
   0x2   : > { %p112_p1 = scmp.lt.s32.totalorder %s1130_s9, 3 }
   0x4   : > { %p113_p2 = pnand %p1057_p0, %p112_p1 }
   0x5   : > { %p134_p3 = scmp.lt.s32.totalorder (!%p113_p2), %s1053_s10, 1  ;;  %s1133_s15 = smov (!%p113_p2), 127  }
   0x6   : > { %116 = sbr.rel (%p113_p2) target bundleno = 716 (0x2cc), region = 28  ;;  %s1134_s18 = smov (!%p113_p2), 126  }
   0x7   : > { %s1135_s19 = smov (!%p113_p2), 112   ;;  %s1136_s20 = smov (!%p113_p2), 111  }
   0x8   : > { %s1137_s21 = smov (!%p113_p2), 110   ;;  %s1138_s22 = smov (!%p113_p2), 96  }
   0x9   : > { %s1139_s23 = smov (!%p113_p2), 95   ;;  %s1140_s24 = smov (!%p113_p2), 94  }
   0xb   : > { %s1246_s10 = smov (!%p134_p3, %s1053_s10), 1  ;;  %v1132_v0 = vmov 0.0   ;;  %vm176_vm0 = vcmask 1043456   ;;  %v157_v4 = vld [vmem:[%s1243_s1] sm:$0xff]  ;;  %vm172_vm1 = vcmask 31744   ;;  %vm169_vm2 = vcmask 1039360  }
   0xc   : > { %s1099_s11 = smul.u32 12, %s1246_s10  ;;  %245 = vmatprep.mubr.f32.mxu0 %v1132_v0  ;;  %323 = vmatprep.mubr.f32.mxu1 %v1132_v0  ;;  %vm338_vm3 = vcmask 1031168   ;;  %v1061_v13 = vld [vmem:[%s1243_s1 + $0x8] sm:$0xff]  ;;  %vm429_vm4 = vcmask 916480   ;;  %v1068_v19 = vld [vmem:[%s1243_s1 + $0x10] sm:$0xff]  ;;  %v1072_v22 = vld [vmem:[%s1243_s1 + $0x18] sm:$0xff] }
   0xd   : > { %vm520_vm5 = vcmask 908288   ;;  %v1076_v28 = vld [vmem:[%s1243_s1 + $0x20] sm:$0xff]  ;;  %vm611_vm6 = vcmask 900096   ;;  %v1080_v34 = vld [vmem:[%s1243_s1 + $0x28] sm:$0xff]  ;;  %vm702_vm7 = vcmask 785408   ;;  %v1084_v40 = vld [vmem:[%s1243_s1 + $0x30] sm:$0xff] }
   0xe   : > { %s138_s14 = scalar_lea.vmem %s1242_s0, %s1099_s11  ;;  %vm793_vm8 = vcmask 777216   ;;  %v1088_v46 = vld [vmem:[%s1243_s1 + $0x38] sm:$0xff]  ;;  %vm884_vm9 = vcmask 769024   ;;  %v1092_v52 = vld [vmem:[%s1243_s1 + $0x40] sm:$0xff] }
   0xf   : > { %v156_v1 = vld [vmem:[%s138_s14 + $0x8] sm:$0xf]  ;;  %v155_v2 = vld [vmem:[%s138_s14] sm:$0xff] }
  0x10   : > { %167 = vrot.lane.b32.xlu0 %v156_v1, %s1133_s15  ;;  %163 = vrot.lane.b32.xlu1 %v155_v2, %s1133_s15  ;;  %v162_v3 = vcombine.high %v155_v2, %v155_v2 }
  0x12   : > { %1065 = vmatprep.subr.msk.mxu1 %vm176_vm0, %v162_v3 }
  0x13   : > { %1066 = vmatpush1.msk.msra.mxu1 %vm176_vm0, %v155_v2 }
  0x14   : > { %336 = vrot.lane.b32.xlu0 %v156_v1, %s1134_s18  ;;  %332 = vrot.lane.b32.xlu1 %v155_v2, %s1134_s18 }
  0x15   : > { %1067 = vmatmul.mubr.msk.f32.vlgmr.msra.gmra.mxu1 %vm172_vm1, %v157_v4 }
  0x16   : > { %503 = vmatprep.mubr.f32.mxu1 %v1132_v0 }
  0x18   : > { %334 = vrot.lane.b32.xlu1 %v162_v3, %s1134_s18  ;;  %165 = vrot.lane.b32.xlu0 %v162_v3, %s1133_s15  ;;  %s1098_s15 = sshll.u32 %s1246_s10, 4 }
  0x19   : > { %s143_s18 = scalar_lea.vmem %s1244_s2, %s1098_s15 }
  0x1c   : > { %427 = vrot.lane.b32.xlu1 %v156_v1, %s1135_s19  ;;  %425 = vrot.lane.b32.xlu0 %v162_v3, %s1135_s19 }
  0x20   : > { %516 = vrot.lane.b32.xlu1 %v162_v3, %s1136_s20  ;;  %423 = vrot.lane.b32.xlu0 %v155_v2, %s1135_s19 }
  0x24   : > { %514 = vrot.lane.b32.xlu1 %v155_v2, %s1136_s20  ;;  %518 = vrot.lane.b32.xlu0 %v156_v1, %s1136_s20 }
  0x28   : > { %609 = vrot.lane.b32.xlu1 %v156_v1, %s1137_s21  ;;  %607 = vrot.lane.b32.xlu0 %v162_v3, %s1137_s21 }
  0x2c   : > { %698 = vrot.lane.b32.xlu1 %v162_v3, %s1138_s22  ;;  %605 = vrot.lane.b32.xlu0 %v155_v2, %s1137_s21 }
  0x30   : > { %696 = vrot.lane.b32.xlu1 %v155_v2, %s1138_s22  ;;  %700 = vrot.lane.b32.xlu0 %v156_v1, %s1138_s22 }
  0x34   : > { %791 = vrot.lane.b32.xlu1 %v156_v1, %s1139_s23  ;;  %789 = vrot.lane.b32.xlu0 %v162_v3, %s1139_s23 }
  0x38   : > { %880 = vrot.lane.b32.xlu1 %v162_v3, %s1140_s24  ;;  %787 = vrot.lane.b32.xlu0 %v155_v2, %s1139_s23  ;;  %v144_v3 = vlaneseq }
  0x3c   : > { %878 = vrot.lane.b32.xlu1 %v155_v2, %s1140_s24  ;;  %882 = vrot.lane.b32.xlu0 %v156_v1, %s1140_s24 }
  0x82   : > { %v168_v5 = vpop.permute.xlu0 %167  ;;  %v164_v6 = vpop.permute.xlu1 %163 }
  0x86   : > { %v337_v7 = vpop.permute.xlu0 %336  ;;  %v333_v8 = vpop.permute.xlu1 %332 }
  0x8a   : > { %v335_v9 = vpop.permute.xlu1 %334  ;;  %v166_v10 = vpop.permute.xlu0 %165 }
  0x8b   : > { %v171_v11 = vsel %vm169_vm2, %v166_v10, %v168_v5  ;;  %v170_v12 = vsel %vm169_vm2, %v164_v6, %v166_v10  ;;  %v340_v14 = vsel %vm338_vm3, %v335_v9, %v337_v7  ;;  %v339_v15 = vsel %vm338_vm3, %v333_v8, %v335_v9 }
  0x8c   : > { %1062 = vmatprep.subr.msk.mxu0 %vm176_vm0, %v171_v11  ;;  %v145_v8 = vand.u32 127, %v144_v3 }
  0x8d   : > { %1063 = vmatpush1.msk.msra.mxu0 %vm176_vm0, %v170_v12 }
  0x8e   : > { %v428_v16 = vpop.permute.xlu1 %427  ;;  %1069 = vmatprep.subr.msk.mxu0 %vm176_vm0, %v340_v14  ;;  %v426_v17 = vpop.permute.xlu0 %425  ;;  %1064 = vmatmul.mubr.msk.f32.vlgmr.msra.gmra.mxu0 %vm172_vm1, %v1061_v13  ;;  %v146_v13 = vadd.s32 128, %v145_v8 }
  0x8f   : > { %v431_v18 = vsel %vm429_vm4, %v426_v17, %v428_v16  ;;  %1070 = vmatpush1.msk.msra.mxu0 %vm176_vm0, %v339_v15  ;;  %412 = vmatprep.mubr.f32.mxu0 %v1132_v0 }
  0x90   : > { %1073 = vmatprep.subr.msk.mxu1 %vm176_vm0, %v431_v18  ;;  %v148_v18 = vand.u32 15, %v146_v13  ;;  %vm152_vm11 = vcmp.lt.s32.totalorder %v146_v13, 224 }
  0x92   : > { %v517_v20 = vpop.permute.xlu1 %516  ;;  %v424_v21 = vpop.permute.xlu0 %423  ;;  %1071 = vmatmul.mubr.msk.f32.vlgmr.msra.gmra.mxu0 %vm172_vm1, %v1068_v19  ;;  %vm150_vm10 = vcmp.lt.s32.totalorder %v148_v18, 14 }
  0x93   : > { %v430_v23 = vsel %vm429_vm4, %v424_v21, %v426_v17  ;;  %594 = vmatprep.mubr.f32.mxu0 %v1132_v0  ;;  %v147_v21 = vand.u32 15, %v145_v8  ;;  %vm154_vm13 = vmand %vm150_vm10, %vm152_vm11 }
  0x94   : > { %1074 = vmatpush1.msk.msra.mxu1 %vm176_vm0, %v430_v23 }
  0x95   : > { %1075 = vmatmul.mubr.msk.f32.vlgmr.msra.gmra.mxu1 %vm172_vm1, %v1072_v22  ;;  %vm149_vm12 = vcmp.lt.s32.totalorder %v147_v21, 14 }
  0x96   : > { %v515_v24 = vpop.permute.xlu1 %514  ;;  %v519_v25 = vpop.permute.xlu0 %518  ;;  %685 = vmatprep.mubr.f32.mxu1 %v1132_v0 }
  0x97   : > { %v521_v26 = vsel %vm520_vm5, %v515_v24, %v517_v20  ;;  %v522_v27 = vsel %vm520_vm5, %v517_v20, %v519_v25 }
  0x98   : > { %1077 = vmatprep.subr.msk.mxu0 %vm176_vm0, %v522_v27 }
  0x99   : > { %1078 = vmatpush1.msk.msra.mxu0 %vm176_vm0, %v521_v26 }
  0x9a   : > { %v610_v29 = vpop.permute.xlu1 %609  ;;  %v608_v30 = vpop.permute.xlu0 %607  ;;  %1079 = vmatmul.mubr.msk.f32.vlgmr.msra.gmra.mxu0 %vm172_vm1, %v1076_v28 }
  0x9b   : > { %v613_v31 = vsel %vm611_vm6, %v608_v30, %v610_v29  ;;  %776 = vmatprep.mubr.f32.mxu0 %v1132_v0 }
  0x9c   : > { %1081 = vmatprep.subr.msk.mxu1 %vm176_vm0, %v613_v31 }
  0x9e   : > { %v699_v32 = vpop.permute.xlu1 %698  ;;  %v606_v33 = vpop.permute.xlu0 %605 }
  0x9f   : > { %v612_v35 = vsel %vm611_vm6, %v606_v33, %v608_v30 }
  0xa0   : > { %1082 = vmatpush1.msk.msra.mxu1 %vm176_vm0, %v612_v35 }
  0xa1   : > { %1083 = vmatmul.mubr.msk.f32.vlgmr.msra.gmra.mxu1 %vm172_vm1, %v1080_v34 }
  0xa2   : > { %v697_v36 = vpop.permute.xlu1 %696  ;;  %v701_v37 = vpop.permute.xlu0 %700  ;;  %867 = vmatprep.mubr.f32.mxu1 %v1132_v0 }
  0xa3   : > { %v703_v38 = vsel %vm702_vm7, %v697_v36, %v699_v32  ;;  %v704_v39 = vsel %vm702_vm7, %v699_v32, %v701_v37 }
  0xa4   : > { %1085 = vmatprep.subr.msk.mxu0 %vm176_vm0, %v704_v39 }
  0xa5   : > { %1086 = vmatpush1.msk.msra.mxu0 %vm176_vm0, %v703_v38 }
  0xa6   : > { %v792_v41 = vpop.permute.xlu1 %791  ;;  %v790_v42 = vpop.permute.xlu0 %789  ;;  %1087 = vmatmul.mubr.msk.f32.vlgmr.msra.gmra.mxu0 %vm172_vm1, %v1084_v40 }
  0xa7   : > { %v795_v43 = vsel %vm793_vm8, %v790_v42, %v792_v41  ;;  %958 = vmatprep.mubr.f32.mxu0 %v1132_v0 }
  0xa8   : > { %1089 = vmatprep.subr.msk.mxu1 %vm176_vm0, %v795_v43 }
  0xaa   : > { %v881_v44 = vpop.permute.xlu1 %880  ;;  %v788_v45 = vpop.permute.xlu0 %787 }
  0xab   : > { %v794_v47 = vsel %vm793_vm8, %v788_v45, %v790_v42 }
  0xac   : > { %1090 = vmatpush1.msk.msra.mxu1 %vm176_vm0, %v794_v47 }
  0xad   : > { %1091 = vmatmul.mubr.msk.f32.vlgmr.msra.gmra.mxu1 %vm172_vm1, %v1088_v46 }
  0xae   : > { %v879_v48 = vpop.permute.xlu1 %878  ;;  %v883_v49 = vpop.permute.xlu0 %882 }
  0xaf   : > { %v885_v50 = vsel %vm884_vm9, %v879_v48, %v881_v44  ;;  %v886_v51 = vsel %vm884_vm9, %v881_v44, %v883_v49 }
  0xb0   : > { %1093 = vmatprep.subr.msk.mxu0 %vm176_vm0, %v886_v51 }
  0xb1   : > { %1094 = vmatpush1.msk.msra.mxu0 %vm176_vm0, %v885_v50 }
  0xb2   : > { %1095 = vmatmul.mubr.msk.f32.vlgmr.msra.gmra.mxu0 %vm172_vm1, %v1092_v52 }
  0xd5   : > { %v325_v55 = vpop.f32.mrf.mxu1 }
  0xd7   : > { %v327_v56 = vpop.f32.mrf.mxu1 }
 0x14e   : > { %v247_v53 = vpop.f32.mrf.mxu0 }
 0x14f   : > { %v326_v58 = vadd.f32 %v325_v55, %v247_v53 }
 0x150   : > { %v249_v54 = vpop.f32.mrf.mxu0 }
 0x151   : > { %v328_v59 = vadd.f32 %v327_v56, %v249_v54 }
 0x152   : > { %v414_v57 = vpop.f32.mrf.mxu0 }
 0x153   : > { %v419_v62 = vadd.f32 %v414_v57, %v326_v58 }
 0x154   : > { %v416_v60 = vpop.f32.mrf.mxu0 }
 0x155   : > { %v505_v61 = vpop.f32.mrf.mxu1  ;;  %v420_v63 = vadd.f32 %v416_v60, %v328_v59 }
 0x156   : > { %v510_v2 = vadd.f32 %v505_v61, %v419_v62 }
 0x157   : > { %v507_v0 = vpop.f32.mrf.mxu1 }
 0x158   : > { %v511_v4 = vadd.f32 %v507_v0, %v420_v63 }
 0x15a   : > { %v596_v1 = vpop.f32.mrf.mxu0 }
 0x15b   : > { %v601_v7 = vadd.f32 %v596_v1, %v510_v2 }
 0x15c   : > { %v598_v5 = vpop.f32.mrf.mxu0 }
 0x15d   : > { %v602_v9 = vadd.f32 %v598_v5, %v511_v4 }
 0x161   : > { %v687_v6 = vpop.f32.mrf.mxu1 }
 0x162   : > { %v692_v12 = vadd.f32 %v687_v6, %v601_v7 }
 0x163   : > { %v689_v10 = vpop.f32.mrf.mxu1 }
 0x164   : > { %v693_v14 = vadd.f32 %v689_v10, %v602_v9 }
 0x166   : > { %v778_v11 = vpop.f32.mrf.mxu0 }
 0x167   : > { %v783_v16 = vadd.f32 %v778_v11, %v692_v12 }
 0x168   : > { %v780_v15 = vpop.f32.mrf.mxu0 }
 0x169   : > { %v784_v19 = vadd.f32 %v780_v15, %v693_v14 }
 0x16d   : > { %v869_v17 = vpop.f32.mrf.mxu1 }
 0x16e   : > { %v874_v22 = vadd.f32 %v869_v17, %v783_v16 }
 0x16f   : > { %v871_v20 = vpop.f32.mrf.mxu1 }
 0x170   : > { %v875_v24 = vadd.f32 %v871_v20, %v784_v19 }
 0x172   : > { %v960_v23 = vpop.f32.mrf.mxu0 }
 0x173   : > { %v965_v25 = vadd.f32 %v960_v23, %v874_v22 }
 0x174   : > { %v962_v26 = vpop.f32.mrf.mxu0 }
 0x175   : > { %v966_v27 = vadd.f32 %v962_v26, %v875_v24  ;;  %v967_v28 = vsel %vm149_vm12, %v965_v25, -1e+30 }
 0x177   : > { %v968_v29 = vsel %vm154_vm13, %v966_v27, -1e+30 }
 0x178   : > { %v969_v30 = vmax.f32 %v967_v28, %v968_v29 }
 0x17a   : > { %970 = vmax.xlane.f32.xlu0 %v969_v30 }
 0x203   : > { %v971_v31 = vpop.xlane.xlu0 %970 }
 0x204   : > { %v972_v32 = vrot.slane %v971_v31, 4 }
 0x206   : > { %v973_v33 = vmax.f32 %v971_v31, %v972_v32 }
 0x208   : > { %v974_v34 = vrot.slane %v973_v33, 2 }
 0x20a   : > { %v975_v35 = vmax.f32 %v973_v33, %v974_v34 }
 0x20c   : > { %v976_v36 = vrot.slane %v975_v35, 1 }
 0x20e   : > { %v977_v37 = vmax.f32 %v975_v35, %v976_v36 }
 0x210   : > { %v978_v38 = vsub.f32 %v967_v28, %v977_v37  ;;  %v979_v39 = vsub.f32 %v968_v29, %v977_v37 }
 0x212   : > { %v980_v40 = vmul.f32 1.442695, %v978_v38  ;;  %v982_v41 = vmul.f32 1.442695, %v979_v39 }
 0x214   : > { %1118 = vpow2.f32 %v980_v40 }
 0x215   : > { %1120 = vpow2.f32 %v982_v41 }
 0x221   : > { %v1119_v42 = vpop.eup %1118 }
 0x222   : > { %v1121_v43 = vpop.eup %1120 }
 0x223   : > { %v984_v44 = vadd.f32 %v1121_v43, %v1119_v42 }
 0x225   : > { %985 = vadd.xlane.f32.xlu1 %v984_v44 }
 0x2ae   : > { %v986_v45 = vpop.xlane.xlu1 %985 }
 0x2af   : > { %v987_v46 = vrot.slane %v986_v45, 4 }
 0x2b1   : > { %v988_v47 = vadd.f32 %v987_v46, %v986_v45 }
 0x2b3   : > { %v989_v48 = vrot.slane %v988_v47, 2 }
 0x2b5   : > { %v990_v49 = vadd.f32 %v989_v48, %v988_v47 }
 0x2b7   : > { %v991_v50 = vrot.slane %v990_v49, 1 }
 0x2b9   : > { %v992_v51 = vadd.f32 %v991_v50, %v990_v49 }
 0x2bb   : > { %1122 = vrcp.f32 %v992_v51 }
 0x2c8   : > { %v1123_v52 = vpop.eup %1122 }
 0x2c9   : > { %v994_v53 = vmul.f32 %v1123_v52, %v1119_v42  ;;  %v995_v54 = vmul.f32 %v1123_v52, %v1121_v43 }
 0x2cb   : > { %996 = vst [vmem:[%s143_s18] sm:$0xff] %v994_v53  ;;  %997 = vst [vmem:[%s143_s18 + $0x8] sm:$0xff] %v995_v54 }
 0x2cc PF: > { %s12_s9 = sadd.s32 1, %s1130_s9  }
 0x2cd   : > { %p9_p4 = scmp.ge.s32.totalorder %s12_s9, 4  }
 0x2cf   :  { %11 = sbr.rel (!%p9_p4) target bundleno = 1 (0x1), region = 66 }

</bundles_post_ra>
